<compile_context>
chip_gen: v7x
topology: tpu7x:2x2x1
jax: 0.10.0
libtpu: 0.0.40
codegen_flags: <defaults>
</compile_context>

<pallas_src>
import jax
import jax.numpy as jnp
import numpy as np
from jax.experimental import pallas as pl
from jax.experimental.pallas import tpu as pltpu

# ---- small configuration consistent with the module ----
IMG = 16             # img_size
PATCH = 8            # patch_size
IN_CH = 3            # in_channels
EMBED = 32           # token_dim == channel_dim == expert_dim
ADAPT = 16           # adapt_dim
NUM_EXPERTS = 2
NUM_CLASSES = 200
OUT_PAD = 256        # head padded to a lane-dense 256
BATCH = 2
SEQ = (IMG // PATCH) ** 2            # num_patches
KDIM = IN_CH * PATCH * PATCH         # flattened patch length
FUSE0 = EMBED + ADAPT + 1            # [emb_mean | adapt | gate logit diff]


# ---------------------------------------------------------------------------
# The single fused kernel. All operands are whole-array VMEM blocks.
# ---------------------------------------------------------------------------
def _lf_fused_kernel(pm_ref, wemb_ref, wmix_ref, t2_ref, whead_ref, bias_ref,
                     out_ref):
    E, A, NE = EMBED, ADAPT, NUM_EXPERTS

    def dot(a, b):
        # bf16 MXU inputs, f32 accumulation (supported on v5e/v6e/v7x).
        return jnp.dot(a.astype(jnp.bfloat16), b,
                       preferred_element_type=jnp.float32)

    # One matmul produces [emb_mean | adapt | gate-logit-diff]   -> [B, 49]
    fused0 = dot(pm_ref[...], wemb_ref[...]) + bias_ref[0:1, 0:FUSE0]
    emb_mean = fused0[:, 0:E]                    # [B, E]
    adapt = fused0[:, E:E + A]                   # [B, A]
    gdiff = fused0[:, E + A:E + A + 1]           # [B, 1]  (logit_1 - logit_0)

    # Batch-mean adapt vector, lane-expanded once to [1, A*E]:
    # column a*E + j holds adapt_vec[a]  (matches the T2 slab row layout).
    adapt_vec = jnp.mean(adapt, axis=0, keepdims=True)            # [1, A]
    adapt_rep = jnp.concatenate(
        [jnp.broadcast_to(adapt_vec[:, a:a + 1], (1, E)) for a in range(A)],
        axis=1)                                                   # [1, A*E]

    # Softmax over 2 experts == exact sigmoid of the logit difference (f32).
    g1 = 1.0 / (1.0 + jnp.exp(-gdiff))                            # [B, 1]
    g0 = 1.0 - g1

    # AdaptiveLinear on pooled rows against the full 128-lane weight slabs:
    #   y_all = x @ [Wtok|Wchan|Wexp0|Wexp1] + (tile_A(x) * adapt_rep) @ T2slab
    def adaptive_all(x):
        z = jnp.concatenate([x] * A, axis=1) * adapt_rep          # [B, A*E]
        return dot(x, wmix_ref[...]) + dot(z, t2_ref[...])        # [B, 4E]

    t_mean = adaptive_all(emb_mean)[:, 0:E] + bias_ref[1:2, 0:E]
    c_mean = adaptive_all(t_mean)[:, E:2 * E] + bias_ref[2:3, 0:E]
    experts = adaptive_all(c_mean)[:, 2 * E:4 * E] + bias_ref[3:4, 0:NE * E]

    # Gate-weighted expert mix, then the (padded, lane-dense) classifier head.
    moe = experts[:, 0:E] * g0 + experts[:, E:2 * E] * g1         # [B, E]
    out_ref[...] = dot(moe, whead_ref[...]) + bias_ref[4:5, :]    # [B, 256]


# ---------------------------------------------------------------------------
# Parameters (deterministic, scaled so activations stay O(1))
# ---------------------------------------------------------------------------
def init_params(key):
    ks = jax.random.split(key, 24)
    E, A, K, NE = EMBED, ADAPT, KDIM, NUM_EXPERTS

    def rn(k, shape, scale):
        return jax.random.normal(k, shape, jnp.float32) * scale

    def adaptive(k):
        k0, k1, k2, k3 = jax.random.split(k, 4)
        return {'w0': rn(k0, (E, E), 1.0 / np.sqrt(E)),
                'b':  rn(k1, (E,), 0.02),
                'aw': rn(k2, (E * E, A), 0.1 / np.sqrt(A)),
                'ab': rn(k3, (E * E,), 0.02)}

    p = {}
    p['conv_w'] = rn(ks[0], (E, IN_CH, PATCH, PATCH), 1.0 / np.sqrt(K))
    p['conv_b'] = rn(ks[1], (E,), 0.02)
    p['pos'] = rn(ks[2], (1, SEQ, E), 0.02)
    p['feat_w'] = rn(ks[3], (A, E), 1.0 / np.sqrt(E))
    p['feat_b'] = rn(ks[4], (A,), 0.02)
    p['tok'] = adaptive(ks[5])
    p['chan'] = adaptive(ks[6])
    p['experts'] = [adaptive(ks[7 + i]) for i in range(NE)]
    p['gate_w'] = rn(ks[20], (NE, A), 1.0 / np.sqrt(A))
    p['gate_b'] = rn(ks[21], (NE,), 0.02)
    p['out_w'] = rn(ks[22], (NUM_CLASSES, E), 1.0 / np.sqrt(E))
    p['out_b'] = rn(ks[23], (NUM_CLASSES,), 0.02)
    return p


def _extract_patches(x):
    # NCHW -> [B, S, K] with K ordered (c, ph, pw) to match Conv2d flattening.
    B, C, H, W = x.shape
    Hp, Wp = H // PATCH, W // PATCH
    pt = x.reshape(B, C, Hp, PATCH, Wp, PATCH)
    pt = pt.transpose(0, 2, 4, 1, 3, 5)                 # [B, Hp, Wp, C, p, p]
    return pt.reshape(B, Hp * Wp, C * PATCH * PATCH)    # [B, S, K]


# ---------------------------------------------------------------------------
# Param-only operand preparation (run once, outside the hot path).
# ---------------------------------------------------------------------------
def prepare_operands(params):
    E, A, K, NE = EMBED, ADAPT, KDIM, NUM_EXPERTS
    f32, bf16 = jnp.float32, jnp.bfloat16

    # Patch embedding (Conv2d as matmul) + mean positional encoding, fused
    # with the featurizer and the gate logit-difference column (all linear,
    # so the fold is exact).
    wconv_t = params['conv_w'].reshape(E, K).T                    # [K, E]
    cbpos = params['conv_b'] + params['pos'][0].mean(axis=0)      # [E]
    featw_t = params['feat_w'].T                                  # [E, A]
    featb = params['feat_b']                                      # [A]
    gate_dw = params['gate_w'][1] - params['gate_w'][0]           # [A]
    gate_db = params['gate_b'][1] - params['gate_b'][0]           # scalar

    wcf = wconv_t @ featw_t                                       # [K, A]
    bcf = cbpos @ featw_t + featb                                 # [A]
    wgd = wcf @ gate_dw                                           # [K]
    bgd = bcf @ gate_dw + gate_db                                 # scalar

    w_emb = jnp.concatenate([wconv_t, wcf, wgd[:, None]],
                            axis=1).astype(bf16)                  # [K, 49]

    # AdaptiveLinear fold:  y = x @ (W0 + Ab)^T + (tile_A(x)*adapt_rep) @ T2 + b
    def fold(layer):
        wbase_t = (layer['w0'] + layer['ab'].reshape(E, E)).T                   # [E, E]
        t2 = layer['aw'].reshape(E, E, A).transpose(2, 1, 0).reshape(A * E, E)  # [A*E, E]
        return wbase_t, t2, layer['b']

    wtok_t, t2tok, btok = fold(params['tok'])
    wchan_t, t2chan, bchan = fold(params['chan'])
    efolds = [fold(e) for e in params['experts']]

    # 128-lane-dense bf16 weight slabs: [tok | chan | expert0 | expert1]
    w_mix = jnp.concatenate([wtok_t, wchan_t] + [f[0] for f in efolds],
                            axis=1).astype(bf16)                  # [E, 4E]
    t2 = jnp.concatenate([t2tok, t2chan] + [f[1] for f in efolds],
                         axis=1).astype(bf16)                     # [A*E, 4E]
    bexp = jnp.concatenate([f[2] for f in efolds], axis=0)        # [NE*E]

    pad = OUT_PAD - NUM_CLASSES
    w_head = jnp.pad(params['out_w'].T, ((0, 0), (0, pad))).astype(bf16)  # [E, 256]

    # All bias rows packed into one f32 [8, 256] slab (kept f32 for v5e VPU).
    bias = jnp.zeros((8, OUT_PAD), f32)
    bias = bias.at[0, :FUSE0].set(jnp.concatenate([cbpos, bcf, bgd[None]]))
    bias = bias.at[1, :E].set(btok)
    bias = bias.at[2, :E].set(bchan)
    bias = bias.at[3, :NE * E].set(bexp)
    bias = bias.at[4, :].set(jnp.pad(params['out_b'], (0, pad)))

    return {'w_emb': w_emb, 'w_mix': w_mix, 't2': t2,
            'w_head': w_head, 'bias': bias}


def _cost_estimate(B):
    E, A, K = EMBED, ADAPT, KDIM
    flops = 2 * B * (K * FUSE0 + 3 * (E * 4 * E + A * E * 4 * E) + E * OUT_PAD)
    bytes_acc = (B * K * 4                      # pooled patches (f32)
                 + K * FUSE0 * 2                # w_emb (bf16)
                 + E * 4 * E * 2                # w_mix
                 + A * E * 4 * E * 2            # t2 slab
                 + E * OUT_PAD * 2              # head
                 + 8 * OUT_PAD * 4              # bias slab
                 + B * OUT_PAD * 4)             # output
    return pl.CostEstimate(flops=flops, transcendentals=B,
                           bytes_accessed=bytes_acc)


@jax.jit
def lf_model_forward(x, ops):
    B = x.shape[0]
    # Everything after the embedding is affine, so the seq-mean commutes to
    # the front: pool the patches here and run the whole model on [B, *] rows.
    pm = _extract_patches(x).mean(axis=1)                         # [B, K]

    vmem = pl.BlockSpec(memory_space=pltpu.MemorySpace.VMEM)
    out_pad = pl.pallas_call(
        _lf_fused_kernel,
        out_shape=jax.ShapeDtypeStruct((B, OUT_PAD), jnp.float32),
        in_specs=[vmem] * 6,
        out_specs=vmem,
        cost_estimate=_cost_estimate(B),
    )(pm, ops['w_emb'], ops['w_mix'], ops['t2'], ops['w_head'], ops['bias'])

    return out_pad[:, :NUM_CLASSES]                               # [B, 200]


# ---------------------------------------------------------------------------
# Pure-JAX reference (mirrors the PyTorch forward exactly) for verification.
# ---------------------------------------------------------------------------
def reference_forward(x, params):
    E, A, NE = EMBED, ADAPT, NUM_EXPERTS
    patches = _extract_patches(x)                              # [B, S, K]
    emb = patches @ params['conv_w'].reshape(E, KDIM).T + params['conv_b']
    emb = emb + params['pos']
    adapt = emb.mean(axis=1) @ params['feat_w'].T + params['feat_b']
    adapt_vec = adapt.mean(axis=0)

    def adaptive_linear(z, layer):
        w = layer['w0'] + (adapt_vec @ layer['aw'].T + layer['ab']).reshape(E, E)
        return z @ w.T + layer['b']

    t = adaptive_linear(emb, params['tok'])
    c = adaptive_linear(t, params['chan'])
    gate = jax.nn.softmax(adapt @ params['gate_w'].T + params['gate_b'], axis=-1)
    moe = sum(gate[:, i][:, None, None] * adaptive_linear(c, params['experts'][i])
              for i in range(NE))
    pooled = moe.mean(axis=1)
    return pooled @ params['out_w'].T + params['out_b']


if __name__ == "__main__":
    key = jax.random.PRNGKey(0)
    kx, kp = jax.random.split(key)
    x = jax.random.normal(kx, (BATCH, IN_CH, IMG, IMG), jnp.float32)
    params = init_params(kp)
    ops = prepare_operands(params)

    out = lf_model_forward(x, ops)
    jax.block_until_ready(out)

    ref = reference_forward(x, params)
    # Tolerance absorbs the bf16 weight/activation casts (f32 accumulation).
    np.testing.assert_allclose(np.asarray(out), np.asarray(ref),
                               rtol=2e-2, atol=2e-2)
    print("KERNEL_OK")
</pallas_src>

<mosaic_0001>
module attributes {stable_mosaic.version = 11 : i64} {
  func.func @_lf_fused_kernel(%arg0: memref<2x192xf32, #tpu.memory_space<vmem>>, %arg1: memref<192x49xbf16, #tpu.memory_space<vmem>>, %arg2: memref<32x128xbf16, #tpu.memory_space<vmem>>, %arg3: memref<512x128xbf16, #tpu.memory_space<vmem>>, %arg4: memref<32x256xbf16, #tpu.memory_space<vmem>>, %arg5: memref<8x256xf32, #tpu.memory_space<vmem>>, %arg6: memref<2x256xf32, #tpu.memory_space<vmem>>) attributes {dimension_semantics = [], scalar_prefetch = 0 : i64, scratch_operands = 0 : i64, tpu.core_type = #tpu.core_type<tc>} {
    %c0 = arith.constant 0 : index
    %c0_0 = arith.constant 0 : index
    %0 = vector.load %arg0[%c0, %c0_0] : memref<2x192xf32, #tpu.memory_space<vmem>>, vector<2x192xf32>
    %c0_1 = arith.constant 0 : index
    %c0_2 = arith.constant 0 : index
    %1 = vector.load %arg1[%c0_1, %c0_2] : memref<192x49xbf16, #tpu.memory_space<vmem>>, vector<192x49xbf16>
    %2 = arith.truncf %0 : vector<2x192xf32> to vector<2x192xbf16>
    %cst = arith.constant dense<0.000000e+00> : vector<2x49xf32>
    %3 = tpu.matmul %2, %1, %cst {dimension_numbers = #tpu.dot_dimension_numbers<[1], [0], [0], [1], [0, 0, 1, 1], [], []>} : vector<2x192xbf16>, vector<192x49xbf16>, vector<2x49xf32> -> vector<2x49xf32>
    %c0_3 = arith.constant 0 : index
    %c0_4 = arith.constant 0 : index
    %4 = vector.load %arg5[%c0_3, %c0_4] : memref<8x256xf32, #tpu.memory_space<vmem>>, vector<1x49xf32>
    %5 = vector.broadcast %4 : vector<1x49xf32> to vector<2x49xf32>
    %6 = arith.addf %3, %5 : vector<2x49xf32>
    %7 = vector.extract_strided_slice %6 {offsets = [0, 0], sizes = [2, 32], strides = [1, 1]} : vector<2x49xf32> to vector<2x32xf32>
    %8 = vector.extract_strided_slice %6 {offsets = [0, 32], sizes = [2, 16], strides = [1, 1]} : vector<2x49xf32> to vector<2x16xf32>
    %9 = vector.extract_strided_slice %6 {offsets = [0, 48], sizes = [2, 1], strides = [1, 1]} : vector<2x49xf32> to vector<2x1xf32>
    %cst_5 = arith.constant dense<0.000000e+00> : vector<16xf32>
    %10 = vector.multi_reduction <add>, %8, %cst_5 [0] : vector<2x16xf32> to vector<16xf32>
    %11 = vector.shape_cast %10 : vector<16xf32> to vector<1x16xf32>
    %cst_6 = arith.constant 2.000000e+00 : f32
    %12 = vector.broadcast %cst_6 : f32 to vector<1x16xf32>
    %13 = arith.divf %11, %12 : vector<1x16xf32>
    %14 = vector.extract_strided_slice %13 {offsets = [0, 0], sizes = [1, 1], strides = [1, 1]} : vector<1x16xf32> to vector<1x1xf32>
    %15 = vector.shape_cast %14 : vector<1x1xf32> to vector<1x1xf32>
    %16 = vector.broadcast %15 : vector<1x1xf32> to vector<1x32xf32>
    %17 = vector.extract_strided_slice %13 {offsets = [0, 1], sizes = [1, 1], strides = [1, 1]} : vector<1x16xf32> to vector<1x1xf32>
    %18 = vector.shape_cast %17 : vector<1x1xf32> to vector<1x1xf32>
    %19 = vector.broadcast %18 : vector<1x1xf32> to vector<1x32xf32>
    %20 = vector.extract_strided_slice %13 {offsets = [0, 2], sizes = [1, 1], strides = [1, 1]} : vector<1x16xf32> to vector<1x1xf32>
    %21 = vector.shape_cast %20 : vector<1x1xf32> to vector<1x1xf32>
    %22 = vector.broadcast %21 : vector<1x1xf32> to vector<1x32xf32>
    %23 = vector.extract_strided_slice %13 {offsets = [0, 3], sizes = [1, 1], strides = [1, 1]} : vector<1x16xf32> to vector<1x1xf32>
    %24 = vector.shape_cast %23 : vector<1x1xf32> to vector<1x1xf32>
    %25 = vector.broadcast %24 : vector<1x1xf32> to vector<1x32xf32>
    %26 = vector.extract_strided_slice %13 {offsets = [0, 4], sizes = [1, 1], strides = [1, 1]} : vector<1x16xf32> to vector<1x1xf32>
    %27 = vector.shape_cast %26 : vector<1x1xf32> to vector<1x1xf32>
    %28 = vector.broadcast %27 : vector<1x1xf32> to vector<1x32xf32>
    %29 = vector.extract_strided_slice %13 {offsets = [0, 5], sizes = [1, 1], strides = [1, 1]} : vector<1x16xf32> to vector<1x1xf32>
    %30 = vector.shape_cast %29 : vector<1x1xf32> to vector<1x1xf32>
    %31 = vector.broadcast %30 : vector<1x1xf32> to vector<1x32xf32>
    %32 = vector.extract_strided_slice %13 {offsets = [0, 6], sizes = [1, 1], strides = [1, 1]} : vector<1x16xf32> to vector<1x1xf32>
    %33 = vector.shape_cast %32 : vector<1x1xf32> to vector<1x1xf32>
    %34 = vector.broadcast %33 : vector<1x1xf32> to vector<1x32xf32>
    %35 = vector.extract_strided_slice %13 {offsets = [0, 7], sizes = [1, 1], strides = [1, 1]} : vector<1x16xf32> to vector<1x1xf32>
    %36 = vector.shape_cast %35 : vector<1x1xf32> to vector<1x1xf32>
    %37 = vector.broadcast %36 : vector<1x1xf32> to vector<1x32xf32>
    %38 = vector.extract_strided_slice %13 {offsets = [0, 8], sizes = [1, 1], strides = [1, 1]} : vector<1x16xf32> to vector<1x1xf32>
    %39 = vector.shape_cast %38 : vector<1x1xf32> to vector<1x1xf32>
    %40 = vector.broadcast %39 : vector<1x1xf32> to vector<1x32xf32>
    %41 = vector.extract_strided_slice %13 {offsets = [0, 9], sizes = [1, 1], strides = [1, 1]} : vector<1x16xf32> to vector<1x1xf32>
    %42 = vector.shape_cast %41 : vector<1x1xf32> to vector<1x1xf32>
    %43 = vector.broadcast %42 : vector<1x1xf32> to vector<1x32xf32>
    %44 = vector.extract_strided_slice %13 {offsets = [0, 10], sizes = [1, 1], strides = [1, 1]} : vector<1x16xf32> to vector<1x1xf32>
    %45 = vector.shape_cast %44 : vector<1x1xf32> to vector<1x1xf32>
    %46 = vector.broadcast %45 : vector<1x1xf32> to vector<1x32xf32>
    %47 = vector.extract_strided_slice %13 {offsets = [0, 11], sizes = [1, 1], strides = [1, 1]} : vector<1x16xf32> to vector<1x1xf32>
    %48 = vector.shape_cast %47 : vector<1x1xf32> to vector<1x1xf32>
    %49 = vector.broadcast %48 : vector<1x1xf32> to vector<1x32xf32>
    %50 = vector.extract_strided_slice %13 {offsets = [0, 12], sizes = [1, 1], strides = [1, 1]} : vector<1x16xf32> to vector<1x1xf32>
    %51 = vector.shape_cast %50 : vector<1x1xf32> to vector<1x1xf32>
    %52 = vector.broadcast %51 : vector<1x1xf32> to vector<1x32xf32>
    %53 = vector.extract_strided_slice %13 {offsets = [0, 13], sizes = [1, 1], strides = [1, 1]} : vector<1x16xf32> to vector<1x1xf32>
    %54 = vector.shape_cast %53 : vector<1x1xf32> to vector<1x1xf32>
    %55 = vector.broadcast %54 : vector<1x1xf32> to vector<1x32xf32>
    %56 = vector.extract_strided_slice %13 {offsets = [0, 14], sizes = [1, 1], strides = [1, 1]} : vector<1x16xf32> to vector<1x1xf32>
    %57 = vector.shape_cast %56 : vector<1x1xf32> to vector<1x1xf32>
    %58 = vector.broadcast %57 : vector<1x1xf32> to vector<1x32xf32>
    %59 = vector.extract_strided_slice %13 {offsets = [0, 15], sizes = [1, 1], strides = [1, 1]} : vector<1x16xf32> to vector<1x1xf32>
    %60 = vector.shape_cast %59 : vector<1x1xf32> to vector<1x1xf32>
    %61 = vector.broadcast %60 : vector<1x1xf32> to vector<1x32xf32>
    %62 = tpu.concatenate %16, %19, %22, %25, %28, %31, %34, %37, %40, %43, %46, %49, %52, %55, %58, %61 in 1 : vector<1x32xf32>, vector<1x32xf32>, vector<1x32xf32>, vector<1x32xf32>, vector<1x32xf32>, vector<1x32xf32>, vector<1x32xf32>, vector<1x32xf32>, vector<1x32xf32>, vector<1x32xf32>, vector<1x32xf32>, vector<1x32xf32>, vector<1x32xf32>, vector<1x32xf32>, vector<1x32xf32>, vector<1x32xf32> -> vector<1x512xf32>
    %cst_7 = arith.constant 0.000000e+00 : f32
    %63 = vector.broadcast %cst_7 : f32 to vector<2x1xf32>
    %64 = arith.subf %63, %9 : vector<2x1xf32>
    %65 = math.exp %64 : vector<2x1xf32>
    %cst_8 = arith.constant 1.000000e+00 : f32
    %66 = vector.broadcast %cst_8 : f32 to vector<2x1xf32>
    %67 = arith.addf %66, %65 : vector<2x1xf32>
    %cst_9 = arith.constant 1.000000e+00 : f32
    %68 = vector.broadcast %cst_9 : f32 to vector<2x1xf32>
    %69 = arith.divf %68, %67 : vector<2x1xf32>
    %cst_10 = arith.constant 1.000000e+00 : f32
    %70 = vector.broadcast %cst_10 : f32 to vector<2x1xf32>
    %71 = arith.subf %70, %69 : vector<2x1xf32>
    %72 = tpu.concatenate %7, %7, %7, %7, %7, %7, %7, %7, %7, %7, %7, %7, %7, %7, %7, %7 in 1 : vector<2x32xf32>, vector<2x32xf32>, vector<2x32xf32>, vector<2x32xf32>, vector<2x32xf32>, vector<2x32xf32>, vector<2x32xf32>, vector<2x32xf32>, vector<2x32xf32>, vector<2x32xf32>, vector<2x32xf32>, vector<2x32xf32>, vector<2x32xf32>, vector<2x32xf32>, vector<2x32xf32>, vector<2x32xf32> -> vector<2x512xf32>
    %73 = vector.broadcast %62 : vector<1x512xf32> to vector<2x512xf32>
    %74 = arith.mulf %72, %73 : vector<2x512xf32>
    %c0_11 = arith.constant 0 : index
    %c0_12 = arith.constant 0 : index
    %75 = vector.load %arg2[%c0_11, %c0_12] : memref<32x128xbf16, #tpu.memory_space<vmem>>, vector<32x128xbf16>
    %76 = arith.truncf %7 : vector<2x32xf32> to vector<2x32xbf16>
    %cst_13 = arith.constant dense<0.000000e+00> : vector<2x128xf32>
    %77 = tpu.matmul %76, %75, %cst_13 {dimension_numbers = #tpu.dot_dimension_numbers<[1], [0], [0], [1], [0, 0, 1, 1], [], []>} : vector<2x32xbf16>, vector<32x128xbf16>, vector<2x128xf32> -> vector<2x128xf32>
    %c0_14 = arith.constant 0 : index
    %c0_15 = arith.constant 0 : index
    %78 = vector.load %arg3[%c0_14, %c0_15] : memref<512x128xbf16, #tpu.memory_space<vmem>>, vector<512x128xbf16>
    %79 = arith.truncf %74 : vector<2x512xf32> to vector<2x512xbf16>
    %cst_16 = arith.constant dense<0.000000e+00> : vector<2x128xf32>
    %80 = tpu.matmul %79, %78, %cst_16 {dimension_numbers = #tpu.dot_dimension_numbers<[1], [0], [0], [1], [0, 0, 1, 1], [], []>} : vector<2x512xbf16>, vector<512x128xbf16>, vector<2x128xf32> -> vector<2x128xf32>
    %81 = arith.addf %77, %80 : vector<2x128xf32>
    %82 = vector.extract_strided_slice %81 {offsets = [0, 0], sizes = [2, 32], strides = [1, 1]} : vector<2x128xf32> to vector<2x32xf32>
    %c1 = arith.constant 1 : index
    %c0_17 = arith.constant 0 : index
    %83 = vector.load %arg5[%c1, %c0_17] : memref<8x256xf32, #tpu.memory_space<vmem>>, vector<1x32xf32>
    %84 = vector.broadcast %83 : vector<1x32xf32> to vector<2x32xf32>
    %85 = arith.addf %82, %84 : vector<2x32xf32>
    %86 = tpu.concatenate %85, %85, %85, %85, %85, %85, %85, %85, %85, %85, %85, %85, %85, %85, %85, %85 in 1 : vector<2x32xf32>, vector<2x32xf32>, vector<2x32xf32>, vector<2x32xf32>, vector<2x32xf32>, vector<2x32xf32>, vector<2x32xf32>, vector<2x32xf32>, vector<2x32xf32>, vector<2x32xf32>, vector<2x32xf32>, vector<2x32xf32>, vector<2x32xf32>, vector<2x32xf32>, vector<2x32xf32>, vector<2x32xf32> -> vector<2x512xf32>
    %87 = vector.broadcast %62 : vector<1x512xf32> to vector<2x512xf32>
    %88 = arith.mulf %86, %87 : vector<2x512xf32>
    %c0_18 = arith.constant 0 : index
    %c0_19 = arith.constant 0 : index
    %89 = vector.load %arg2[%c0_18, %c0_19] : memref<32x128xbf16, #tpu.memory_space<vmem>>, vector<32x128xbf16>
    %90 = arith.truncf %85 : vector<2x32xf32> to vector<2x32xbf16>
    %cst_20 = arith.constant dense<0.000000e+00> : vector<2x128xf32>
    %91 = tpu.matmul %90, %89, %cst_20 {dimension_numbers = #tpu.dot_dimension_numbers<[1], [0], [0], [1], [0, 0, 1, 1], [], []>} : vector<2x32xbf16>, vector<32x128xbf16>, vector<2x128xf32> -> vector<2x128xf32>
    %c0_21 = arith.constant 0 : index
    %c0_22 = arith.constant 0 : index
    %92 = vector.load %arg3[%c0_21, %c0_22] : memref<512x128xbf16, #tpu.memory_space<vmem>>, vector<512x128xbf16>
    %93 = arith.truncf %88 : vector<2x512xf32> to vector<2x512xbf16>
    %cst_23 = arith.constant dense<0.000000e+00> : vector<2x128xf32>
    %94 = tpu.matmul %93, %92, %cst_23 {dimension_numbers = #tpu.dot_dimension_numbers<[1], [0], [0], [1], [0, 0, 1, 1], [], []>} : vector<2x512xbf16>, vector<512x128xbf16>, vector<2x128xf32> -> vector<2x128xf32>
    %95 = arith.addf %91, %94 : vector<2x128xf32>
    %96 = vector.extract_strided_slice %95 {offsets = [0, 32], sizes = [2, 32], strides = [1, 1]} : vector<2x128xf32> to vector<2x32xf32>
    %c2 = arith.constant 2 : index
    %c0_24 = arith.constant 0 : index
    %97 = vector.load %arg5[%c2, %c0_24] : memref<8x256xf32, #tpu.memory_space<vmem>>, vector<1x32xf32>
    %98 = vector.broadcast %97 : vector<1x32xf32> to vector<2x32xf32>
    %99 = arith.addf %96, %98 : vector<2x32xf32>
    %100 = tpu.concatenate %99, %99, %99, %99, %99, %99, %99, %99, %99, %99, %99, %99, %99, %99, %99, %99 in 1 : vector<2x32xf32>, vector<2x32xf32>, vector<2x32xf32>, vector<2x32xf32>, vector<2x32xf32>, vector<2x32xf32>, vector<2x32xf32>, vector<2x32xf32>, vector<2x32xf32>, vector<2x32xf32>, vector<2x32xf32>, vector<2x32xf32>, vector<2x32xf32>, vector<2x32xf32>, vector<2x32xf32>, vector<2x32xf32> -> vector<2x512xf32>
    %101 = vector.broadcast %62 : vector<1x512xf32> to vector<2x512xf32>
    %102 = arith.mulf %100, %101 : vector<2x512xf32>
    %c0_25 = arith.constant 0 : index
    %c0_26 = arith.constant 0 : index
    %103 = vector.load %arg2[%c0_25, %c0_26] : memref<32x128xbf16, #tpu.memory_space<vmem>>, vector<32x128xbf16>
    %104 = arith.truncf %99 : vector<2x32xf32> to vector<2x32xbf16>
    %cst_27 = arith.constant dense<0.000000e+00> : vector<2x128xf32>
    %105 = tpu.matmul %104, %103, %cst_27 {dimension_numbers = #tpu.dot_dimension_numbers<[1], [0], [0], [1], [0, 0, 1, 1], [], []>} : vector<2x32xbf16>, vector<32x128xbf16>, vector<2x128xf32> -> vector<2x128xf32>
    %c0_28 = arith.constant 0 : index
    %c0_29 = arith.constant 0 : index
    %106 = vector.load %arg3[%c0_28, %c0_29] : memref<512x128xbf16, #tpu.memory_space<vmem>>, vector<512x128xbf16>
    %107 = arith.truncf %102 : vector<2x512xf32> to vector<2x512xbf16>
    %cst_30 = arith.constant dense<0.000000e+00> : vector<2x128xf32>
    %108 = tpu.matmul %107, %106, %cst_30 {dimension_numbers = #tpu.dot_dimension_numbers<[1], [0], [0], [1], [0, 0, 1, 1], [], []>} : vector<2x512xbf16>, vector<512x128xbf16>, vector<2x128xf32> -> vector<2x128xf32>
    %109 = arith.addf %105, %108 : vector<2x128xf32>
    %110 = vector.extract_strided_slice %109 {offsets = [0, 64], sizes = [2, 64], strides = [1, 1]} : vector<2x128xf32> to vector<2x64xf32>
    %c3 = arith.constant 3 : index
    %c0_31 = arith.constant 0 : index
    %111 = vector.load %arg5[%c3, %c0_31] : memref<8x256xf32, #tpu.memory_space<vmem>>, vector<1x64xf32>
    %112 = vector.broadcast %111 : vector<1x64xf32> to vector<2x64xf32>
    %113 = arith.addf %110, %112 : vector<2x64xf32>
    %114 = vector.extract_strided_slice %113 {offsets = [0, 0], sizes = [2, 32], strides = [1, 1]} : vector<2x64xf32> to vector<2x32xf32>
    %115 = vector.broadcast %71 : vector<2x1xf32> to vector<2x32xf32>
    %116 = arith.mulf %114, %115 : vector<2x32xf32>
    %117 = vector.extract_strided_slice %113 {offsets = [0, 32], sizes = [2, 32], strides = [1, 1]} : vector<2x64xf32> to vector<2x32xf32>
    %118 = vector.broadcast %69 : vector<2x1xf32> to vector<2x32xf32>
    %119 = arith.mulf %117, %118 : vector<2x32xf32>
    %120 = arith.addf %116, %119 : vector<2x32xf32>
    %c0_32 = arith.constant 0 : index
    %c0_33 = arith.constant 0 : index
    %121 = vector.load %arg4[%c0_32, %c0_33] : memref<32x256xbf16, #tpu.memory_space<vmem>>, vector<32x256xbf16>
    %122 = arith.truncf %120 : vector<2x32xf32> to vector<2x32xbf16>
    %cst_34 = arith.constant dense<0.000000e+00> : vector<2x256xf32>
    %123 = tpu.matmul %122, %121, %cst_34 {dimension_numbers = #tpu.dot_dimension_numbers<[1], [0], [0], [1], [0, 0, 1, 1], [], []>} : vector<2x32xbf16>, vector<32x256xbf16>, vector<2x256xf32> -> vector<2x256xf32>
    %c4 = arith.constant 4 : index
    %c0_35 = arith.constant 0 : index
    %124 = vector.load %arg5[%c4, %c0_35] : memref<8x256xf32, #tpu.memory_space<vmem>>, vector<1x256xf32>
    %125 = vector.broadcast %124 : vector<1x256xf32> to vector<2x256xf32>
    %126 = arith.addf %123, %125 : vector<2x256xf32>
    %c0_36 = arith.constant 0 : index
    %c0_37 = arith.constant 0 : index
    %127 = vector.load %arg6[%c0_36, %c0_37] : memref<2x256xf32, #tpu.memory_space<vmem>>, vector<2x256xf32>
    tpu.vector_store %arg6[%c0_36, %c0_37], %126 {strides = array<i32>} : memref<2x256xf32, #tpu.memory_space<vmem>>, vector<2x256xf32>,
    return
  }
}

</mosaic_0001>

<bundles_post_ra>
// kernel: lf_model_forward.1
= control target key start
LH: loop header
LB: loop body
LE: loop exit
PB: predicated region body
PF: predicated region fallthrough
CT: control target
= control target key end

     0   :  { %v1489_v1 = vmov 0   ;;  %vm136_vm0 = vcmask 523264   ;;  %s2022_s0 = inlined_call_operand.vmem [shape: f32[2,192], index: 0, kind: input, shape index: {}]   ;;  %s2023_s1 = inlined_call_operand.vmem [shape: bf16[192,49], index: 1, kind: input, shape index: {}]   ;;  %s2024_s2 = inlined_call_operand.vmem [shape: bf16[32,128], index: 2, kind: input, shape index: {}]   ;;  %s2025_s3 = inlined_call_operand.vmem [shape: bf16[512,128], index: 3, kind: input, shape index: {}]   ;;  %s2026_s4 = inlined_call_operand.vmem [shape: bf16[32,256], index: 4, kind: input, shape index: {}]   ;;  %s2027_s5 = inlined_call_operand.vmem [shape: f32[8,256], index: 5, kind: input, shape index: {}]   ;;  %s2028_s6 = inlined_call_operand.hbm [shape: f32[2,256], index: 6, kind: output, shape index: {}]  }
   0x1   :  { %v1409_v0 = vld [vmem:[%s2023_s1] sm:$0xff]   ;;  %140 = vmatprep.subr.bf16.mxu0 %v1489_v1  ;;  %v1410_v2 = vld [vmem:[%s2023_s1 + $0x8] sm:$0xff]   ;;  %v1411_v3 = vld [vmem:[%s2023_s1 + $0x10] sm:$0xff]  }
   0x2   :  { %141 = vmatpush1.bf16.msra.mxu0 %v1409_v0  ;;  %v1412_v4 = vld [vmem:[%s2023_s1 + $0x18] sm:$0xff]   ;;  %v1144_v5 = vld.sshfl [vmem:[%s2022_s0] sm:$0x33 pattern:$0x76325410]  ;;  %v1414_v9 = vld [vmem:[%s2023_s1 + $0x28] sm:$0xff]  }
   0x3   :  { %142 = vmatprep.subr.bf16.mxu0 %v1489_v1  ;;  %v1413_v6 = vld [vmem:[%s2023_s1 + $0x20] sm:$0xff]   ;;  %v58_v7 = vcombine.high %v1144_v5, %v1144_v5  ;;  %v1415_v10 = vld [vmem:[%s2023_s1 + $0x30] sm:$0xff]   ;;  %v1416_v11 = vld [vmem:[%s2023_s1 + $0x38] sm:$0xff]  }
   0x4   :  { %v1417_v12 = vld [vmem:[%s2023_s1 + $0x40] sm:$0xff]   ;;  %v1418_v13 = vld [vmem:[%s2023_s1 + $0x48] sm:$0xff]  }
   0x5   :  { %v62_v8 = vpack.c.bf16 %v58_v7, %v58_v7 }
   0x6   :  { %143 = vmatpush1.bf16.msra.mxu0 %v1410_v2 }
   0x7   :  { %144 = vmatprep.subr.bf16.mxu0 %v1489_v1  ;;  %1157 = vmatprep.mubr.msk.bf16.mxu0 %vm136_vm0, %v62_v8 }
   0xa   :  { %145 = vmatpush1.bf16.msra.mxu0 %v1411_v3 }
   0xb   :  { %146 = vmatprep.subr.bf16.mxu0 %v1489_v1 }
   0xe   :  { %147 = vmatpush1.bf16.msra.mxu0 %v1412_v4 }
   0xf   :  { %148 = vmatprep.subr.bf16.mxu0 %v1489_v1 }
  0x12   :  { %149 = vmatpush1.bf16.msra.mxu0 %v1413_v6 }
  0x13   :  { %150 = vmatprep.subr.bf16.mxu0 %v1489_v1 }
  0x16   :  { %151 = vmatpush1.bf16.msra.mxu0 %v1414_v9 }
  0x17   :  { %152 = vmatprep.subr.bf16.mxu0 %v1489_v1 }
  0x1a   :  { %153 = vmatpush1.bf16.msra.mxu0 %v1415_v10 }
  0x1b   :  { %154 = vmatprep.subr.bf16.mxu0 %v1489_v1 }
  0x1e   :  { %155 = vmatpush1.bf16.msra.mxu0 %v1416_v11 }
  0x1f   :  { %156 = vmatprep.subr.bf16.mxu0 %v1489_v1 }
  0x22   :  { %157 = vmatpush1.bf16.msra.mxu0 %v1417_v12 }
  0x23   :  { %158 = vmatprep.subr.bf16.mxu0 %v1489_v1 }
  0x24   :  { %11 = vsyncpa [#allocation3], 0  ;;  %v1419_v14 = vld [vmem:[%s2023_s1 + $0x50] sm:$0xff]   ;;  %v1420_v15 = vld [vmem:[%s2023_s1 + $0x58] sm:$0xff]   ;;  %v61_v16 = vpack.c.bf16 %v1144_v5, %v1144_v5  ;;  %v1490_v18 = vmov 0.0   ;;  %vm1491_vm1 = vmmov 0   ;;  %v289_v11 = vlaneseq }
  0x25   :  { %v1603_v17 = vld [vmem:[%s2024_s2] sm:$0xff]   ;;  %v1611_v19 = vld [vmem:[%s2024_s2 + $0x8] sm:$0xff]   ;;  %v1492_v20 = vmov 36   ;;  %v1493_v21 = vmov 32   ;;  %vm180_vm2 = vcmask 386304   ;;  %vm255_vm3 = vcmask 261120  }
  0x26   :  { %159 = vmatpush1.bf16.msra.mxu0 %v1418_v13  ;;  %1391 = vset.pattern.permute.xlu0 %v1492_v20  ;;  %v1619_v22 = vld [vmem:[%s2025_s3 + $0x40] sm:$0xff]   ;;  %v1644_v39 = vld [vmem:[%s2025_s3 + $0x48] sm:$0xff]   ;;  %v1494_v41 = vmov 33   ;;  %v1495_v42 = vmov 37   ;;  %v1660_v43 = vld [vmem:[%s2025_s3 + $0x50] sm:$0xff]   ;;  %v1496_v46 = vmov 38  }
  0x27   :  { %160 = vmatprep.subr.bf16.mxu0 %v1489_v1  ;;  %1393 = vset.pattern.permute.xlu1 %v1493_v21  ;;  %v1624_v23 = vld [vmem:[%s2025_s3] sm:$0xff]   ;;  %v1649_v40 = vld [vmem:[%s2025_s3 + $0x8] sm:$0xff]   ;;  %v1667_v44 = vld [vmem:[%s2025_s3 + $0x10] sm:$0xff]   ;;  %v1497_v47 = vmov 34   ;;  %v1498_v51 = vmov 39   ;;  %s1499_s21 = smov 32  }
  0x28   :  { %1202 = vmatprep.subr.bf16.mxu1 %v1619_v22  ;;  %v63_v24 = vld [vmem:[%s2027_s5] ss:$0 sm:$0xff]  ;;  %v1676_v45 = vld [vmem:[%s2025_s3 + $0x58] sm:$0xff]   ;;  %v1500_v52 = vmov 45   ;;  %v1706_v53 = vld [vmem:[%s2025_s3 + $0x68] sm:$0xff]   ;;  %s1501_s1 = smov 96  }
  0x29   :  { %1203 = vmatpush3.bf16.msra.mxu1 %v1624_v23  ;;  %v1681_v48 = vld [vmem:[%s2025_s3 + $0x18] sm:$0xff]   ;;  %v1691_v49 = vld [vmem:[%s2025_s3 + $0x60] sm:$0xff]   ;;  %v1713_v54 = vld [vmem:[%s2025_s3 + $0x28] sm:$0xff]   ;;  %v1502_v55 = vmov 35   ;;  %s1503_s29 = smov 64   ;;  %v1504_v59 = vmov 44  }
  0x2a   :  { %161 = vmatpush1.bf16.msra.mxu0 %v1419_v14  ;;  %1204 = vmatprep.subr.bf16.mxu1 %v1644_v39  ;;  %v1697_v50 = vld [vmem:[%s2025_s3 + $0x20] sm:$0xff]   ;;  %v1724_v56 = vld [vmem:[%s2025_s3 + $0x70] sm:$0xff]   ;;  %v1741_v58 = vld [vmem:[%s2025_s3 + $0x78] sm:$0xff]   ;;  %v1505_v61 = vmov 46   ;;  %v1506_v63 = vmov 43   ;;  %v1507_v0 = vmov 40  }
  0x2b   :  { %162 = vmatprep.subr.bf16.mxu0 %v1489_v1  ;;  %v1730_v57 = vld [vmem:[%s2025_s3 + $0x30] sm:$0xff]   ;;  %v1747_v60 = vld [vmem:[%s2025_s3 + $0x38] sm:$0xff]   ;;  %v1756_v62 = vld [vmem:[%s2025_s3 + $0xc0] sm:$0xff]   ;;  %v1508_v2 = vmov 41   ;;  %v1509_v3 = vmov 42   ;;  %v1510_v4 = vmov 47  }
  0x2c   :  { %v1768_v13 = vshrl.u32 %v289_v11, 7  ;;  %vm258_vm4 = vcmask 785408  }
  0x2d   :  { %1205 = vmatpush3.bf16.msra.mxu1 %v1649_v40 }
  0x2e   :  { %163 = vmatpush1.bf16.msra.mxu0 %v1420_v15  ;;  %1206 = vmatprep.subr.bf16.mxu1 %v1660_v43 }
  0x2f   :  { %1343 = vmatprep.subr.bf16.mxu0 %v1490_v18 }
  0x31   :  { %173 = vmatmul.mubr.bf16.vlgmr.msra.gmra.mrb[0].mxu0 %v61_v16  ;;  %1207 = vmatpush3.bf16.msra.mxu1 %v1667_v44 }
  0x32   :  { %1344 = vmatpush3.bf16.msra.mxu0 %v1603_v17  ;;  %1347 = vmatprep.mubr.msk.bf16.mxu0 %vm1491_vm1, %v1490_v18 }
  0x33   :  { %1345 = vmatprep.subr.bf16.mxu0 %v1490_v18  ;;  %1208 = vmatprep.subr.bf16.mxu1 %v1676_v45 }
  0x35   :  { %1209 = vmatpush3.bf16.msra.mxu1 %v1681_v48 }
  0x36   :  { %1346 = vmatpush3.bf16.msra.mxu0 %v1611_v19  ;;  %1210 = vmatprep.subr.bf16.mxu1 %v1691_v49 }
  0x37   :  { %1249 = vmatprep.subr.bf16.mxu0 %v1619_v22 }
  0x39   :  { %1211 = vmatpush3.bf16.msra.mxu1 %v1697_v50 }
  0x3a   :  { %1212 = vmatprep.subr.bf16.mxu1 %v1706_v53 }
  0x3d   :  { %1213 = vmatpush3.bf16.msra.mxu1 %v1713_v54 }
  0x3e   :  { %1214 = vmatprep.subr.bf16.mxu1 %v1724_v56 }
  0x41   :  { %1215 = vmatpush3.bf16.msra.mxu1 %v1730_v57 }
  0x42   :  { %1216 = vmatprep.subr.bf16.mxu1 %v1741_v58 }
  0x45   :  { %1217 = vmatpush3.bf16.msra.mxu1 %v1747_v60 }
  0x46   :  { %1224 = vmatprep.subr.bf16.mxu1 %v1756_v62 }
 0x104   :  { %v174_v25 = vpop.f32.mrb[0].mxu0 }
 0x105   :  { %v1632_v26 = vadd.f32 %v174_v25, %v63_v24  ;;  %v176_v27 = vpop.f32.mrb[1].mxu0  ;;  %v1775_v25 = vsub.s32 0, %v1768_v13 }
 0x106   :  { %v177_v28 = vpop.f32.mrb[2].mxu0 }
 0x107   :  { %v181_v29 = vsel %vm180_vm2, %v1632_v26, 0.0  ;;  %v178_v30 = vpop.f32.mrb[3].mxu0  ;;  %v313_v31 = vpack.c.bf16 %v1632_v26, %v1632_v26 }
 0x108   :  { %v182_v32 = vrot.slane %v181_v29, 4 }
 0x109   :  { %1348 = vmatmul.mubr.msk.bf16.vlgmr.msra.gmra.mrb[4].mxu0 %vm255_vm3, %v313_v31 }
 0x10a   :  { %v183_v33 = vadd.f32 %v182_v32, %v181_v29  ;;  %1250 = vmatpush3.bf16.msra.mxu0 %v1624_v23 }
 0x10b   :  { %1251 = vmatprep.subr.bf16.mxu0 %v1644_v39 }
 0x10c   :  { %v184_v34 = vrot.slane %v183_v33, 2 }
 0x10e   :  { %v185_v35 = vadd.f32 %v184_v34, %v183_v33  ;;  %1252 = vmatpush3.bf16.msra.mxu0 %v1649_v40 }
 0x10f   :  { %1253 = vmatprep.subr.bf16.mxu0 %v1660_v43 }
 0x110   :  { %v186_v36 = vrot.slane %v185_v35, 1 }
 0x112   :  { %v187_v37 = vadd.f32 %v186_v36, %v185_v35  ;;  %1254 = vmatpush3.bf16.msra.mxu0 %v1667_v44 }
 0x113   :  { %1255 = vmatprep.subr.bf16.mxu0 %v1676_v45 }
 0x114   :  { %v1639_v38 = vmul.f32 0.5, %v187_v37 }
 0x116   :  { %192 = vperm.xlu1 %1393, %v1639_v38   ;;  %208 = vperm.xlu0 %1391, %v1639_v38  }
 0x117   :  { %1256 = vmatpush3.bf16.msra.mxu0 %v1681_v48 }
 0x118   :  { %1257 = vmatprep.subr.bf16.mxu0 %v1691_v49 }
 0x11a   :  { %1394 = vset.pattern.permute.xlu1 %v1494_v41  ;;  %1392 = vset.pattern.permute.xlu0 %v1495_v42 }
 0x11b   :  { %196 = vperm.xlu1 %1394, %v1639_v38   ;;  %212 = vperm.xlu0 %1392, %v1639_v38  }
 0x11c   :  { %1258 = vmatpush3.bf16.msra.mxu0 %v1697_v50 }
 0x11d   :  { %1259 = vmatprep.subr.bf16.mxu0 %v1706_v53 }
 0x11f   :  { %1395 = vset.pattern.permute.xlu1 %v1496_v46  ;;  %1396 = vset.pattern.permute.xlu0 %v1497_v47  ;;  %v1794_v46 = vld [vmem:[%s2025_s3 + $0x80] sm:$0xff]   ;;  %v1799_v47 = vld [vmem:[%s2025_s3 + $0xc8] sm:$0xff]  }
 0x120   :  { %216 = vperm.xlu1 %1395, %v1639_v38   ;;  %200 = vperm.xlu0 %1396, %v1639_v38  }
 0x121   :  { %1260 = vmatpush3.bf16.msra.mxu0 %v1713_v54 }
 0x122   :  { %1261 = vmatprep.subr.bf16.mxu0 %v1724_v56 }
 0x124   :  { %1397 = vset.pattern.permute.xlu1 %v1498_v51  ;;  %277 = vrot.lane.b32.xlu0 %v1632_v26, %s1499_s21 }
 0x125   :  { %220 = vperm.xlu1 %1397, %v1639_v38   ;;  %1400 = vset.pattern.permute.xlu0 %v1500_v52  ;;  %v1805_v52 = vld [vmem:[%s2025_s3 + $0x88] sm:$0xff]  }
 0x126   :  { %1262 = vmatpush3.bf16.msra.mxu0 %v1730_v57 }
 0x127   :  { %1263 = vmatprep.subr.bf16.mxu0 %v1741_v58 }
 0x128   :  { %283 = vrot.lane.b32.xlu0 %v1632_v26, %s1501_s1 }
 0x129   :  { %1398 = vset.pattern.permute.xlu1 %v1502_v55  ;;  %v1811_v55 = vld [vmem:[%s2025_s3 + $0xd0] sm:$0xff]  }
 0x12a   :  { %204 = vperm.xlu1 %1398, %v1639_v38   ;;  %1264 = vmatpush3.bf16.msra.mxu0 %v1747_v60 }
 0x12b   :  { %1351 = vmatprep.subr.bf16.mxu0 %v1490_v18 }
 0x12c   :  { %244 = vperm.xlu0 %1400, %v1639_v38  }
 0x12e   :  { %280 = vrot.lane.b32.xlu1 %v1632_v26, %s1503_s29 }
 0x12f   :  { %1399 = vset.pattern.permute.xlu1 %v1504_v59  ;;  %v1817_v59 = vld [vmem:[%s2025_s3 + $0x90] sm:$0xff]  }
 0x130   :  { %1403 = vset.pattern.permute.xlu0 %v1505_v61 }
 0x131   :  { %248 = vperm.xlu0 %1403, %v1639_v38  }
 0x132   :  { %240 = vperm.xlu1 %1399, %v1639_v38  }
 0x135   :  { %1406 = vset.pattern.permute.xlu0 %v1506_v63 }
 0x136   :  { %1401 = vset.pattern.permute.xlu1 %v1507_v0  ;;  %236 = vperm.xlu0 %1406, %v1639_v38   ;;  %v1823_v0 = vld [vmem:[%s2025_s3 + $0xd8] sm:$0xff]  }
 0x137   :  { %224 = vperm.xlu1 %1401, %v1639_v38  }
 0x13b   :  { %1402 = vset.pattern.permute.xlu1 %v1508_v2  ;;  %v1829_v2 = vld [vmem:[%s2025_s3 + $0x98] sm:$0xff]  }
 0x13c   :  { %228 = vperm.xlu1 %1402, %v1639_v38  }
 0x140   :  { %1404 = vset.pattern.permute.xlu1 %v1509_v3  ;;  %v1835_v3 = vld [vmem:[%s2025_s3 + $0xe0] sm:$0xff]  }
 0x141   :  { %232 = vperm.xlu1 %1404, %v1639_v38  }
 0x145   :  { %1405 = vset.pattern.permute.xlu1 %v1510_v4 }
 0x146   :  { %252 = vperm.xlu1 %1405, %v1639_v38  }
 0x195   :  { %v193_v5 = vpop.permute.xlu1 %192  ;;  %v209_v6 = vpop.permute.xlu0 %208 }
 0x19a   :  { %v197_v7 = vpop.permute.xlu1 %196  ;;  %v213_v8 = vpop.permute.xlu0 %212 }
 0x19b   :  { %v256_v15 = vsel %vm255_vm3, %v193_v5, %v197_v7  ;;  %v260_v16 = vsel %vm255_vm3, %v209_v6, %v213_v8  ;;  %v1842_v7 = vld [vmem:[%s2025_s3 + $0xa0] sm:$0xff]   ;;  %v1848_v8 = vld [vmem:[%s2025_s3 + $0xe8] sm:$0xff]  }
 0x19f   :  { %v217_v9 = vpop.permute.xlu1 %216  ;;  %v201_v10 = vpop.permute.xlu0 %200 }
 0x1a0   :  { %v261_v21 = vsel %vm136_vm0, %v260_v16, %v217_v9  ;;  %v257_v24 = vsel %vm136_vm0, %v256_v15, %v201_v10  ;;  %v1858_v15 = vld [vmem:[%s2025_s3 + $0xa8] sm:$0xff]  }
 0x1a3   :  { %v278_v14 = vpop.permute.xlu0 %277 }
 0x1a4   :  { %v221_v12 = vpop.permute.xlu1 %220  ;;  %v286_v29 = vsel %vm255_vm3, %v1632_v26, %v278_v14 }
 0x1a5   :  { %v262_v27 = vsel %vm258_vm4, %v261_v21, %v221_v12  ;;  %v1867_v21 = vld [vmem:[%s2025_s3 + $0xf0] sm:$0xff]  }
 0x1a6   :  { %v1782_v31 = vrot.slane %v262_v27, %v1775_v25 }
 0x1a7   :  { %v284_v32 = vpop.permute.xlu0 %283 }
 0x1a9   :  { %v205_v20 = vpop.permute.xlu1 %204 }
 0x1aa   :  { %v259_v28 = vsel %vm258_vm4, %v257_v24, %v205_v20 }
 0x1ab   :  { %v1785_v33 = vrot.slane %v259_v28, %v1775_v25  ;;  %v245_v61 = vpop.permute.xlu0 %244  ;;  %v1875_v28 = vld [vmem:[%s2025_s3 + $0xb0] sm:$0xff]  }
 0x1ad   :  { %v281_v30 = vpop.permute.xlu1 %280 }
 0x1ae   :  { %v287_v34 = vsel %vm136_vm0, %v286_v29, %v281_v30 }
 0x1af   :  { %v288_v35 = vsel %vm258_vm4, %v287_v34, %v284_v32  ;;  %v1884_v32 = vld [vmem:[%s2025_s3 + $0xf8] sm:$0xff]  }
 0x1b0   :  { %v306_v36 = vmul.f32 %v1782_v31, %v288_v35  ;;  %v305_v37 = vmul.f32 %v1785_v33, %v288_v35  ;;  %v249_v5 = vpop.permute.xlu0 %248  ;;  %v1890_v34 = vld [vmem:[%s2025_s3 + $0xb8] sm:$0xff]  }
 0x1b1   :  { %v241_v38 = vpop.permute.xlu1 %240 }
 0x1b2   :  { %v379_v41 = vpack.c.bf16 %v306_v36, %v306_v36  ;;  %v378_v42 = vpack.c.bf16 %v305_v37, %v305_v37  ;;  %v266_v6 = vsel %vm255_vm3, %v241_v38, %v245_v61 }
 0x1b3   :  { %v267_v12 = vsel %vm136_vm0, %v266_v6, %v249_v5 }
 0x1b4   :  { %606 = vmatprep.mubr.bf16.mxu1 %v379_v41 }
 0x1b5   :  { %607 = vmatmul.mubr.bf16.vlgmr.msra.gmra.mrb[0].mxu1 %v378_v42  ;;  %v237_v16 = vpop.permute.xlu0 %236 }
 0x1b6   :  { %1225 = vmatpush3.bf16.msra.mxu1 %v1794_v46  ;;  %v225_v51 = vpop.permute.xlu1 %224 }
 0x1b7   :  { %1226 = vmatprep.subr.bf16.mxu1 %v1799_v47 }
 0x1ba   :  { %1227 = vmatpush3.bf16.msra.mxu1 %v1805_v52 }
 0x1bb   :  { %v229_v63 = vpop.permute.xlu1 %228  ;;  %1228 = vmatprep.subr.bf16.mxu1 %v1811_v55 }
 0x1bc   :  { %v263_v9 = vsel %vm255_vm3, %v225_v51, %v229_v63 }
 0x1be   :  { %1229 = vmatpush3.bf16.msra.mxu1 %v1817_v59 }
 0x1bf   :  { %1230 = vmatprep.subr.bf16.mxu1 %v1823_v0 }
 0x1c0   :  { %v233_v4 = vpop.permute.xlu1 %232 }
 0x1c1   :  { %v264_v10 = vsel %vm136_vm0, %v263_v9, %v233_v4 }
 0x1c2   :  { %1231 = vmatpush3.bf16.msra.mxu1 %v1829_v2  ;;  %v265_v24 = vsel %vm258_vm4, %v264_v10, %v237_v16  ;;  %v709_v16 = vld [vmem:[%s2027_s5 + $0x1] ss:$0 sm:$0xff] }
 0x1c3   :  { %1232 = vmatprep.subr.bf16.mxu1 %v1835_v3  ;;  %v1878_v29 = vrot.slane %v265_v24, %v1775_v25 }
 0x1c5   :  { %v253_v11 = vpop.permute.xlu1 %252  ;;  %v307_v36 = vmul.f32 %v1878_v29, %v288_v35 }
 0x1c6   :  { %v268_v14 = vsel %vm258_vm4, %v267_v12, %v253_v11  ;;  %1233 = vmatpush3.bf16.msra.mxu1 %v1842_v7 }
 0x1c7   :  { %v1861_v20 = vrot.slane %v268_v14, %v1775_v25  ;;  %1234 = vmatprep.subr.bf16.mxu1 %v1848_v8  ;;  %v380_v37 = vpack.c.bf16 %v307_v36, %v307_v36 }
 0x1c9   :  { %v308_v27 = vmul.f32 %v1861_v20, %v288_v35 }
 0x1ca   :  { %1235 = vmatpush3.bf16.msra.mxu1 %v1858_v15 }
 0x1cb   :  { %1236 = vmatprep.subr.bf16.mxu1 %v1867_v21  ;;  %v381_v30 = vpack.c.bf16 %v308_v27, %v308_v27 }
 0x1cd   :  { %646 = vmatprep.mubr.bf16.mxu1 %v381_v30 }
 0x1ce   :  { %1237 = vmatpush3.bf16.msra.mxu1 %v1875_v28 }
 0x1cf   :  { %1238 = vmatprep.subr.bf16.mxu1 %v1884_v32 }
 0x1d2   :  { %1239 = vmatpush3.bf16.msra.mxu1 %v1890_v34 }
 0x1d3   :  { %1271 = vmatprep.subr.bf16.mxu1 %v1756_v62 }
 0x1d5   :  { %647 = vmatmul.mubr.bf16.vlgmr.msra.gmra.mrb[4].mxu1 %v380_v37 }
 0x1d6   :  { %1272 = vmatpush3.bf16.msra.mxu1 %v1794_v46 }
 0x1d7   :  { %1273 = vmatprep.subr.bf16.mxu1 %v1799_v47 }
 0x1da   :  { %1274 = vmatpush3.bf16.msra.mxu1 %v1805_v52 }
 0x1db   :  { %1275 = vmatprep.subr.bf16.mxu1 %v1811_v55 }
 0x1dc   :  { %v703_v38 = vpop.f32.mrb[4].mxu0 }
 0x1dd   :  { %v1349_v41 = vpop.f32.mrb[5].mxu0 }
 0x1de   :  { %v706_v42 = vpop.f32.mrb[6].mxu0  ;;  %1276 = vmatpush3.bf16.msra.mxu1 %v1817_v59 }
 0x1df   :  { %v1350_v35 = vpop.f32.mrb[7].mxu0  ;;  %1277 = vmatprep.subr.bf16.mxu1 %v1823_v0 }
 0x1e2   :  { %1278 = vmatpush3.bf16.msra.mxu1 %v1829_v2 }
 0x1e3   :  { %1279 = vmatprep.subr.bf16.mxu1 %v1835_v3 }
 0x1e6   :  { %1280 = vmatpush3.bf16.msra.mxu1 %v1842_v7 }
 0x1e7   :  { %1281 = vmatprep.subr.bf16.mxu1 %v1848_v8 }
 0x1ea   :  { %1282 = vmatpush3.bf16.msra.mxu1 %v1858_v15 }
 0x1eb   :  { %1283 = vmatprep.subr.bf16.mxu1 %v1867_v21 }
 0x1ee   :  { %1284 = vmatpush3.bf16.msra.mxu1 %v1875_v28 }
 0x1ef   :  { %1285 = vmatprep.subr.bf16.mxu1 %v1884_v32 }
 0x1f2   :  { %1286 = vmatpush3.bf16.msra.mxu1 %v1890_v34 }
 0x1f3   :  { %1318 = vmatprep.subr.bf16.mxu1 %v1756_v62  ;;  %v856_v62 = vld [vmem:[%s2027_s5 + $0x2] ss:$0 sm:$0xff] }
 0x288   :  { %v1218_v51 = vpop.f32.mrb[0].mxu1 }
 0x289   :  { %v1219_v61 = vpop.f32.mrb[1].mxu1 }
 0x28a   :  { %v1220_v63 = vadd.f32 %v1219_v61, %v1218_v51  ;;  %v1221_v4 = vpop.f32.mrb[2].mxu1 }
 0x28b   :  { %v1222_v5 = vpop.f32.mrb[3].mxu1 }
 0x2a8   :  { %v1240_v6 = vpop.f32.mrb[4].mxu1 }
 0x2a9   :  { %v1241_v9 = vpop.f32.mrb[5].mxu1 }
 0x2aa   :  { %v1242_v10 = vadd.f32 %v1241_v9, %v1240_v6  ;;  %v1243_v11 = vpop.f32.mrb[6].mxu1 }
 0x2ab   :  { %v1244_v12 = vpop.f32.mrb[7].mxu1 }
 0x2ac   :  { %v649_v14 = vadd.f32 %v1242_v10, %v1220_v63 }
 0x2ae   :  { %v704_v24 = vadd.f32 %v703_v38, %v649_v14 }
 0x2b0   :  { %v710_v27 = vadd.f32 %v709_v16, %v704_v24 }
 0x2b2   :  { %718 = vrot.lane.b32.xlu0 %v710_v27, %s1501_s1  ;;  %712 = vrot.lane.b32.xlu1 %v710_v27, %s1499_s21  ;;  %v728_v10 = vpack.c.bf16 %v710_v27, %v710_v27 }
 0x2b6   :  { %715 = vrot.lane.b32.xlu1 %v710_v27, %s1503_s29 }
 0x2ba   :  { %858 = vrot.lane.b32.xlu1 %v856_v62, %s1499_s21 }
 0x324   :  { %v713_v30 = vpop.permute.xlu1 %712  ;;  %v719_v41 = vpop.permute.xlu0 %718 }
 0x325   :  { %v721_v36 = vsel %vm255_vm3, %v710_v27, %v713_v30 }
 0x328   :  { %v716_v37 = vpop.permute.xlu1 %715 }
 0x329   :  { %v722_v38 = vsel %vm136_vm0, %v721_v36, %v716_v37 }
 0x32a   :  { %v723_v42 = vsel %vm258_vm4, %v722_v38, %v719_v41 }
 0x32b   :  { %v725_v35 = vmul.f32 %v723_v42, %v1782_v31  ;;  %v727_v51 = vmul.f32 %v723_v42, %v1861_v20  ;;  %v724_v61 = vmul.f32 %v723_v42, %v1785_v33  ;;  %v726_v63 = vmul.f32 %v723_v42, %v1878_v29 }
 0x32d   :  { %v730_v4 = vpack.c.bf16 %v725_v35, %v725_v35  ;;  %v732_v5 = vpack.c.bf16 %v727_v51, %v727_v51  ;;  %v729_v6 = vpack.c.bf16 %v724_v61, %v724_v61  ;;  %v731_v9 = vpack.c.bf16 %v726_v63, %v726_v63 }
 0x32f   :  { %765 = vmatprep.mubr.bf16.mxu0 %v730_v4  ;;  %805 = vmatprep.mubr.bf16.mxu1 %v732_v5 }
 0x330   :  { %766 = vmatmul.mubr.bf16.vlgmr.msra.gmra.mrb[8].mxu0 %v729_v6  ;;  %806 = vmatmul.mubr.bf16.vlgmr.msra.gmra.mrb[8].mxu1 %v731_v9  ;;  %v1458_v6 = vld [vmem:[%s2026_s4 + $0x10] ss:$8 sps:$4 sm:$0xff]  }
 0x331   :  { %1352 = vmatpush3.bf16.msra.mxu0 %v1603_v17  ;;  %1355 = vmatprep.mubr.msk.bf16.mxu0 %vm1491_vm1, %v1490_v18 }
 0x332   :  { %1353 = vmatprep.subr.bf16.mxu0 %v1490_v18  ;;  %1319 = vmatpush3.bf16.msra.mxu1 %v1794_v46 }
 0x333   :  { %1320 = vmatprep.subr.bf16.mxu1 %v1799_v47  ;;  %v859_v47 = vpop.permute.xlu1 %858 }
 0x335   :  { %1354 = vmatpush3.bf16.msra.mxu0 %v1611_v19 }
 0x336   :  { %1296 = vmatprep.subr.bf16.mxu0 %v1619_v22  ;;  %1321 = vmatpush3.bf16.msra.mxu1 %v1805_v52  ;;  %v1511_v22 = vmov 48  }
 0x337   :  { %1322 = vmatprep.subr.bf16.mxu1 %v1811_v55  ;;  %1407 = vset.pattern.permute.xlu0 %v1511_v22 }
 0x338   :  { %1356 = vmatmul.mubr.msk.bf16.vlgmr.msra.gmra.mrb[12].mxu0 %vm255_vm3, %v728_v10  ;;  %1408 = vset.pattern.permute.xlu1 %v1511_v22 }
 0x339   :  { %1297 = vmatpush3.bf16.msra.mxu0 %v1624_v23  ;;  %v269_v23 = vsub.f32 0.0, %v1632_v26 }
 0x33a   :  { %1298 = vmatprep.subr.bf16.mxu0 %v1644_v39  ;;  %1323 = vmatpush3.bf16.msra.mxu1 %v1817_v59 }
 0x33b   :  { %1324 = vmatprep.subr.bf16.mxu1 %v1823_v0  ;;  %v270_v39 = vmul.f32 1.442695, %v269_v23 }
 0x33d   :  { %1299 = vmatpush3.bf16.msra.mxu0 %v1649_v40  ;;  %1461 = vpow2.f32 %v270_v39 }
 0x33e   :  { %1300 = vmatprep.subr.bf16.mxu0 %v1660_v43  ;;  %1325 = vmatpush3.bf16.msra.mxu1 %v1829_v2 }
 0x33f   :  { %1326 = vmatprep.subr.bf16.mxu1 %v1835_v3  ;;  %v1010_v3 = vld [vmem:[%s2027_s5 + $0x3] ss:$0 sm:$0xff] }
 0x341   :  { %1301 = vmatpush3.bf16.msra.mxu0 %v1667_v44 }
 0x342   :  { %1302 = vmatprep.subr.bf16.mxu0 %v1676_v45  ;;  %1327 = vmatpush3.bf16.msra.mxu1 %v1842_v7 }
 0x343   :  { %1328 = vmatprep.subr.bf16.mxu1 %v1848_v8 }
 0x345   :  { %1303 = vmatpush3.bf16.msra.mxu0 %v1681_v48 }
 0x346   :  { %1304 = vmatprep.subr.bf16.mxu0 %v1691_v49  ;;  %1329 = vmatpush3.bf16.msra.mxu1 %v1858_v15 }
 0x347   :  { %1330 = vmatprep.subr.bf16.mxu1 %v1867_v21 }
 0x349   :  { %1305 = vmatpush3.bf16.msra.mxu0 %v1697_v50 }
 0x34a   :  { %1306 = vmatprep.subr.bf16.mxu0 %v1706_v53  ;;  %1331 = vmatpush3.bf16.msra.mxu1 %v1875_v28 }
 0x34b   :  { %1332 = vmatprep.subr.bf16.mxu1 %v1884_v32 }
 0x34d   :  { %1307 = vmatpush3.bf16.msra.mxu0 %v1713_v54  ;;  %v1462_v54 = vpop.eup %1461 }
 0x34e   :  { %1308 = vmatprep.subr.bf16.mxu0 %v1724_v56  ;;  %1333 = vmatpush3.bf16.msra.mxu1 %v1890_v34 }
 0x351   :  { %1309 = vmatpush3.bf16.msra.mxu0 %v1730_v57 }
 0x352   :  { %1310 = vmatprep.subr.bf16.mxu0 %v1741_v58 }
 0x355   :  { %1311 = vmatpush3.bf16.msra.mxu0 %v1747_v60  ;;  %v272_v60 = vadd.f32 1.0, %v1462_v54  ;;  %v1047_v54 = vsub.s32 1, %v1768_v13 }
 0x356   :  { %1359 = vmatprep.subr.bf16.mxu0 %v1490_v18 }
 0x357   :  { %1463 = vrcp.f32 %v272_v60 }
 0x361   :  { %v1464_v7 = vpop.eup %1463 }
 0x362   :  { %v275_v8 = vsub.f32 1.0, %v1464_v7 }
 0x403   :  { %v1265_v40 = vpop.f32.mrb[8].mxu0  ;;  %v1287_v43 = vpop.f32.mrb[8].mxu1 }
 0x404   :  { %v1266_v44 = vpop.f32.mrb[9].mxu0  ;;  %v1288_v45 = vpop.f32.mrb[9].mxu1 }
 0x405   :  { %v1267_v48 = vadd.f32 %v1266_v44, %v1265_v40  ;;  %v1289_v49 = vadd.f32 %v1288_v45, %v1287_v43  ;;  %v1268_v50 = vpop.f32.mrb[10].mxu0  ;;  %v1290_v53 = vpop.f32.mrb[10].mxu1 }
 0x406   :  { %v1269_v56 = vpop.f32.mrb[11].mxu0  ;;  %v1291_v57 = vpop.f32.mrb[11].mxu1  ;;  %v1195_v53 = vld [vmem:[%s2027_s5 + $0x4] ss:$8 sm:$0x3] }
 0x407   :  { %v808_v58 = vadd.f32 %v1289_v49, %v1267_v48  ;;  %v1044_v56 = vrot.slane %v1195_v53, %v1775_v25  ;;  %v1048_v57 = vrot.slane %v1195_v53, %v1047_v54 }
 0x40b   :  { %v850_v46 = vpop.f32.mrb[12].mxu0 }
 0x40c   :  { %v851_v52 = vadd.f32 %v850_v46, %v808_v58  ;;  %v1357_v55 = vpop.f32.mrb[13].mxu0 }
 0x40d   :  { %v853_v26 = vpop.f32.mrb[14].mxu0 }
 0x40e   :  { %v861_v59 = vadd.f32 %v859_v47, %v851_v52  ;;  %v1358_v0 = vpop.f32.mrb[15].mxu0 }
 0x410   :  { %866 = vrot.lane.b32.xlu1 %v861_v59, %s1499_s21  ;;  %863 = vrot.lane.b32.xlu0 %v861_v59, %s1501_s1  ;;  %v879_v2 = vpack.c.bf16 %v861_v59, %v861_v59 }
 0x414   :  { %869 = vrot.lane.b32.xlu0 %v861_v59, %s1503_s29  ;;  %965 = vrot.lane.b32.xlu1 %v879_v2, %s1501_s1 }
 0x418   :  { %1024 = vperm.xlu0 %1407, %v1464_v7   ;;  %1012 = vrot.lane.b32.xlu1 %v1010_v3, %s1503_s29 }
 0x41c   :  { %1018 = vperm.xlu1 %1408, %v275_v8  }
 0x482   :  { %v864_v15 = vpop.permute.xlu0 %863  ;;  %v867_v21 = vpop.permute.xlu1 %866 }
 0x483   :  { %v872_v28 = vsel %vm255_vm3, %v864_v15, %v861_v59 }
 0x484   :  { %v873_v32 = vsel %vm136_vm0, %v872_v28, %v867_v21 }
 0x486   :  { %v870_v34 = vpop.permute.xlu0 %869 }
 0x487   :  { %v874_v11 = vsel %vm258_vm4, %v873_v32, %v870_v34 }
 0x488   :  { %v875_v12 = vmul.f32 %v874_v11, %v1785_v33  ;;  %v877_v14 = vmul.f32 %v874_v11, %v1878_v29  ;;  %v876_v16 = vmul.f32 %v874_v11, %v1782_v31  ;;  %v878_v24 = vmul.f32 %v874_v11, %v1861_v20  ;;  %v966_v31 = vpop.permute.xlu1 %965 }
 0x48a   :  { %v880_v27 = vpack.c.bf16 %v875_v12, %v875_v12  ;;  %v882_v62 = vpack.c.bf16 %v877_v14, %v877_v14  ;;  %v881_v30 = vpack.c.bf16 %v876_v16, %v876_v16  ;;  %v883_v36 = vpack.c.bf16 %v878_v24, %v878_v24 }
 0x48c   :  { %916 = vmatprep.mubr.bf16.mxu0 %v881_v30  ;;  %956 = vmatprep.mubr.bf16.mxu1 %v883_v36  ;;  %v1013_v9 = vpop.permute.xlu1 %1012 }
 0x48d   :  { %917 = vmatmul.mubr.bf16.vlgmr.msra.gmra.mrb[16].mxu0 %v880_v27  ;;  %957 = vmatmul.mubr.bf16.vlgmr.msra.gmra.mrb[12].mxu1 %v882_v62 }
 0x48e   :  { %1360 = vmatpush3.bf16.msra.mxu0 %v1603_v17  ;;  %1363 = vmatprep.mubr.msk.bf16.mxu0 %vm1491_vm1, %v1490_v18 }
 0x48f   :  { %1361 = vmatprep.subr.bf16.mxu0 %v1490_v18  ;;  %1109 = vmatprep.mubr.bf16.mxu1 %v1489_v1  ;;  %v1455_v1 = vld [vmem:[%s2026_s4] ss:$8 sps:$4 sm:$0xff]   ;;  %v1457_v18 = vld [vmem:[%s2026_s4 + $0x4] ss:$8 sps:$4 sm:$0xff]  }
 0x490   :  { %1077 = vmatprep.subr.bf16.mxu1 %v1457_v18 }
 0x491   :  { %1078 = vmatpush1.bf16.msra.mxu1 %v1455_v1 }
 0x492   :  { %1362 = vmatpush3.bf16.msra.mxu0 %v1611_v19  ;;  %v1460_v19 = vld [vmem:[%s2026_s4 + $0x14] ss:$8 sps:$4 sm:$0xff]  }
 0x493   :  { %1079 = vmatprep.subr.bf16.mxu1 %v1460_v19 }
 0x495   :  { %1364 = vmatmul.mubr.msk.bf16.vlgmr.msra.gmra.mrb[20].mxu0 %vm255_vm3, %v966_v31  ;;  %1080 = vmatpush1.bf16.msra.mxu1 %v1458_v6 }
 0x497   :  { %v1025_v39 = vpop.permute.xlu0 %1024 }
 0x49b   :  { %v1019_v43 = vpop.permute.xlu1 %1018 }
 0x560   :  { %v1312_v33 = vpop.f32.mrb[16].mxu0  ;;  %v1334_v20 = vpop.f32.mrb[12].mxu1 }
 0x561   :  { %v1313_v29 = vpop.f32.mrb[17].mxu0  ;;  %v1335_v37 = vpop.f32.mrb[13].mxu1 }
 0x562   :  { %v1314_v41 = vadd.f32 %v1313_v29, %v1312_v33  ;;  %v1336_v38 = vadd.f32 %v1335_v37, %v1334_v20  ;;  %v1315_v42 = vpop.f32.mrb[18].mxu0  ;;  %v1337_v17 = vpop.f32.mrb[14].mxu1 }
 0x563   :  { %v1316_v35 = vpop.f32.mrb[19].mxu0  ;;  %v1338_v51 = vpop.f32.mrb[15].mxu1 }
 0x564   :  { %v959_v61 = vadd.f32 %v1336_v38, %v1314_v41 }
 0x568   :  { %v1004_v63 = vpop.f32.mrb[20].mxu0 }
 0x569   :  { %v1005_v4 = vadd.f32 %v1004_v63, %v959_v61  ;;  %v1365_v5 = vpop.f32.mrb[21].mxu0 }
 0x56a   :  { %v1007_v10 = vpop.f32.mrb[22].mxu0 }
 0x56b   :  { %v1015_v22 = vadd.f32 %v1013_v9, %v1005_v4  ;;  %v1366_v23 = vpop.f32.mrb[23].mxu0 }
 0x56d   :  { %v1027_v40 = vmul.f32 %v1025_v39, %v1015_v22  ;;  %v1021_v44 = vmul.f32 %v1019_v43, %v1015_v22 }
 0x56f   :  { %1029 = vrot.lane.b32.xlu0 %v1027_v40, %s1501_s1  ;;  %s1512_s1 = smov [#allocation2]  }
 0x570   :  { %s1136_s7 = sshll.u32 %s1512_s1, 4  ;;  %s1137_s7 = int_to_ptr.vmem [resolvable:$true] %s1136_s7 }
 0x571   :  { %p1470_p1 = scmp.lt.s32.totalorder %s1137_s7, %s1137_s7 }
 0x5e1   :  { %v1030_v45 = vpop.permute.xlu0 %1029 }
 0x5e2   :  { %v1032_v48 = vadd.f32 %v1030_v45, %v1021_v44 }
 0x5e4   :  { %v1037_v49 = vpack.c.bf16 %v1032_v48, %v1032_v48 }
 0x5e6   :  { %1052 = vrot.lane.b32.xlu1 %v1037_v49, %s1503_s29  ;;  %s1465_s29 = scalar_lea.vmem %s1137_s7, 64 }
 0x5e7   :  { %p1466_p0 = scmp.ne.s32.totalorder %s1137_s7, %s1465_s29  ;;  %p1471_p2 = scmp.lt.s32.totalorder %s1465_s29, %s1465_s29 }
 0x5e9   :  { %p1472_p3 = por %p1471_p2, %p1470_p1 }
 0x5eb   :  { %p1473_p4 = pnand %p1472_p3, %p1466_p0 }
 0x658   :  { %v1053_v50 = vpop.permute.xlu1 %1052 }
 0x659   :  { %1200 = vmatmul.mubr.msk.bf16.vlgmr.msra.gmra.mrb[16].mxu1 %vm255_vm3, %v1053_v50 }
 0x72c   :  { %v1111_v58 = vpop.f32.mrb[16].mxu1 }
 0x72d   :  { %v1112_v60 = vadd.f32 %v1111_v58, %v1044_v56  ;;  %v1113_v46 = vpop.f32.mrb[17].mxu1 }
 0x72e   :  { %v1114_v47 = vadd.f32 %v1113_v46, %v1048_v57  ;;  %v1115_v52 = vpop.f32.mrb[18].mxu1 }
 0x72f   :  { %v1116_v55 = vpop.f32.mrb[19].mxu1 }
 0x730   :  { %v1120_v26 = vcombine.low %v1112_v60, %v1114_v47 }
 0x732   :  { %1201 = vst.sshfl [vmem:[#allocation2] sm:$0x33 pattern:$0x76325410] %v1120_v26 }
 0x733   :  { %1476 = shalt.err (!%p1473_p4)
}
 0x734   :  { %s1477_s9 = scalar_lea.hbm %s2028_s6, 64 }
 0x735   :  { %p1478_p5 = scmp.ne.s32.totalorder %s2028_s6, %s1477_s9  ;;  %p1481_p6 = scmp.lt.u32.totalorder %s1477_s9, %s2028_s6 }
 0x737   :  { %p1483_p7 = pnand %p1481_p6, %p1478_p5 }
 0x739   :  { %1486 = shalt.err (!%p1483_p7)
}
 0x73a   :  { %1139 = dma.vmem_to_hbm [thread:$0]  %s1137_s7, 64, %s2028_s6, [#allocation3]  }
 0x73b   :  { %1487 = dma.done.wait [#allocation3], 64  }
 0x73c   :  { %1488 = vsyncadd [#allocation3], 4294967232 }
 0x73d   :  { %1143 = vsyncpa [#allocation3], 1 }

</bundles_post_ra>
